<compile_context>
chip_gen: v5e
topology: v5e:2x2
jax: 0.10.0
libtpu: 0.0.40
codegen_flags: <defaults>
</compile_context>

<pallas_src>
import functools

import jax
import jax.numpy as jnp
from jax.experimental import pallas as pl
from jax.experimental.pallas import tpu as pltpu

LANES = 128
_SINGLE_BLOCK_MAX_ROWS = 8192   # 8192x128 f32 = 4 MiB per input: one gridless call
_BLOCK_ROWS = 4096              # 2 MiB per input block on the tiled path


def _mse_single_block_kernel(gt_ref, p_ref, out_ref, *, scale):
    """Whole (rows,128) slab in one VMEM block: sum((gt-P)^2) * scale."""
    d = gt_ref[...].astype(jnp.float32) - p_ref[...].astype(jnp.float32)
    out_ref[0, 0] = jnp.sum(d * d) * jnp.float32(scale)


def _mse_tiled_kernel(gt_ref, p_ref, out_ref, acc_ref, *,
                      block_rows, n_valid_rows, needs_mask, scale):
    """Sequential reduction over row tiles with a single-vreg accumulator.

    grid = (n_tiles,). acc_ref is (8,128); each block is folded into it with
    pure VPU adds. The cross-lane reduce happens exactly once, at finalize.
    """
    i = pl.program_id(0)
    n_tiles = pl.num_programs(0)

    @pl.when(i == 0)
    def _init():
        acc_ref[...] = jnp.zeros_like(acc_ref)

    d = gt_ref[...].astype(jnp.float32) - p_ref[...].astype(jnp.float32)
    sq = d * d

    def fold(x):
        # (block_rows, 128) -> (8, 128): elementwise vreg adds only (no XLU).
        return x.reshape(-1, 8, LANES).sum(axis=0)

    if needs_mask:
        # Only the last tile is ragged; interior tiles skip the mask entirely.
        @pl.when(i < n_tiles - 1)
        def _interior():
            acc_ref[...] += fold(sq)

        @pl.when(i == n_tiles - 1)
        def _ragged():
            row_ids = i * block_rows + jax.lax.broadcasted_iota(
                jnp.int32, sq.shape, 0)
            acc_ref[...] += fold(
                jnp.where(row_ids < n_valid_rows, sq, jnp.float32(0.0)))
    else:
        acc_ref[...] += fold(sq)

    @pl.when(i == n_tiles - 1)
    def _finalize():
        out_ref[0, 0] = jnp.sum(acc_ref[...]) * jnp.float32(scale)


def _mse_aligned_2d(gt2d, p2d, scale):
    """sum((gt2d - p2d)^2) * scale for a (rows, 128) pair via Pallas."""
    rows = gt2d.shape[0]

    if rows <= _SINGLE_BLOCK_MAX_ROWS:
        out = pl.pallas_call(
            functools.partial(_mse_single_block_kernel, scale=scale),
            out_shape=jax.ShapeDtypeStruct((1, 1), jnp.float32),
            in_specs=[
                pl.BlockSpec(memory_space=pltpu.MemorySpace.VMEM),
                pl.BlockSpec(memory_space=pltpu.MemorySpace.VMEM),
            ],
            out_specs=pl.BlockSpec(memory_space=pltpu.MemorySpace.SMEM),
        )(gt2d, p2d)
        return out[0, 0]

    n_tiles = pl.cdiv(rows, _BLOCK_ROWS)
    needs_mask = (rows % _BLOCK_ROWS) != 0

    kernel = functools.partial(
        _mse_tiled_kernel,
        block_rows=_BLOCK_ROWS,
        n_valid_rows=rows,
        needs_mask=needs_mask,
        scale=scale,
    )

    out = pl.pallas_call(
        kernel,
        out_shape=jax.ShapeDtypeStruct((1, 1), jnp.float32),
        grid=(n_tiles,),
        in_specs=[
            pl.BlockSpec((_BLOCK_ROWS, LANES), lambda i: (i, 0)),
            pl.BlockSpec((_BLOCK_ROWS, LANES), lambda i: (i, 0)),
        ],
        out_specs=pl.BlockSpec(
            (1, 1), lambda i: (0, 0), memory_space=pltpu.MemorySpace.SMEM
        ),
        scratch_shapes=[pltpu.VMEM((8, LANES), jnp.float32)],
        compiler_params=pltpu.CompilerParams(
            dimension_semantics=("arbitrary",)
        ),
    )(gt2d, p2d)
    return out[0, 0]


def instance_align_loss(gt, P):
    """MSE(gt, P) == mean((gt - P)**2), computed with Pallas TPU kernels."""
    assert gt.shape == P.shape, "gt and P must have identical shapes"
    n_elems = int(gt.size)
    inv_n = 1.0 / float(n_elems)

    gt_flat = gt.reshape(-1)
    p_flat = P.reshape(-1)

    rows = n_elems // LANES
    rem = n_elems % LANES
    main = rows * LANES

    # Degenerate tiny input (< one lane row): plain jnp, nothing to tile.
    if rows == 0:
        d = gt_flat.astype(jnp.float32) - p_flat.astype(jnp.float32)
        return jnp.sum(d * d) * jnp.float32(inv_n)

    if rem == 0:
        # Common case: free metadata reshape, no copies, no padding.
        gt2d = gt_flat.reshape(rows, LANES)
        p2d = p_flat.reshape(rows, LANES)
        return _mse_aligned_2d(gt2d, p2d, inv_n)

    # Ragged lane count: the <128-element tail is reduced with a trivial jnp op
    # in the wrapper; the lane-aligned prefix goes through the kernel. (No
    # full-size jnp.pad copy of both operands.)
    gt2d = jax.lax.slice(gt_flat, (0,), (main,)).reshape(rows, LANES)
    p2d = jax.lax.slice(p_flat, (0,), (main,)).reshape(rows, LANES)
    main_loss = _mse_aligned_2d(gt2d, p2d, inv_n)

    gt_tail = jax.lax.slice(gt_flat, (main,), (n_elems,)).astype(jnp.float32)
    p_tail = jax.lax.slice(p_flat, (main,), (n_elems,)).astype(jnp.float32)
    dt = gt_tail - p_tail
    tail_loss = jnp.sum(dt * dt) * jnp.float32(inv_n)

    return main_loss + tail_loss


if __name__ == "__main__":
    key = jax.random.PRNGKey(0)

    # 1) Demo shape (NCHW feature-map pair): single-block fast path, rem == 0.
    k1, k2, key = jax.random.split(key, 3)
    gt = jax.random.normal(k1, (2, 4, 16, 16), dtype=jnp.float32)
    P = jax.random.normal(k2, (2, 4, 16, 16), dtype=jnp.float32)
    loss = instance_align_loss(gt, P)
    jax.block_until_ready(loss)
    ref = jnp.mean((gt - P) ** 2)
    assert jnp.allclose(loss, ref, rtol=1e-6, atol=1e-6), (loss, ref)

    # 2) Numel not a multiple of 128: aligned prefix via kernel + jnp lane tail.
    k1, k2, key = jax.random.split(key, 3)
    gt2 = jax.random.normal(k1, (3, 5, 7, 11), dtype=jnp.float32)
    P2 = jax.random.normal(k2, (3, 5, 7, 11), dtype=jnp.float32)
    loss2 = instance_align_loss(gt2, P2)
    jax.block_until_ready(loss2)
    ref2 = jnp.mean((gt2 - P2) ** 2)
    assert jnp.allclose(loss2, ref2, rtol=1e-6, atol=1e-6), (loss2, ref2)

    # 3) Mid-sized map (~2 MiB): now handled by the enlarged single-block path.
    k1, k2, key = jax.random.split(key, 3)
    gt3 = jax.random.normal(k1, (4, 16, 64, 130), dtype=jnp.float32)
    P3 = jax.random.normal(k2, (4, 16, 64, 130), dtype=jnp.float32)
    loss3 = instance_align_loss(gt3, P3)
    jax.block_until_ready(loss3)
    ref3 = jnp.mean((gt3 - P3) ** 2)
    assert jnp.allclose(loss3, ref3, rtol=1e-5, atol=1e-6), (loss3, ref3)

    # 4) Large map (>8192 rows): tiled path with a ragged last row tile.
    k1, k2, key = jax.random.split(key, 3)
    gt4 = jax.random.normal(k1, (4, 17, 128, 128), dtype=jnp.float32)
    P4 = jax.random.normal(k2, (4, 17, 128, 128), dtype=jnp.float32)
    loss4 = instance_align_loss(gt4, P4)
    jax.block_until_ready(loss4)
    ref4 = jnp.mean((gt4 - P4) ** 2)
    assert jnp.allclose(loss4, ref4, rtol=1e-5, atol=1e-6), (loss4, ref4)

    print("KERNEL_OK")
</pallas_src>

<mosaic_0001>
module attributes {stable_mosaic.version = 11 : i64} {
  func.func @_mse_single_block_kernel(%arg0: memref<16x128xf32, #tpu.memory_space<vmem>>, %arg1: memref<16x128xf32, #tpu.memory_space<vmem>>, %arg2: memref<1x1xf32, #tpu.memory_space<smem>>) attributes {dimension_semantics = [], scalar_prefetch = 0 : i64, scratch_operands = 0 : i64, tpu.core_type = #tpu.core_type<tc>} {
    %c0 = arith.constant 0 : index
    %c0_0 = arith.constant 0 : index
    %0 = vector.load %arg0[%c0, %c0_0] : memref<16x128xf32, #tpu.memory_space<vmem>>, vector<16x128xf32>
    %c0_1 = arith.constant 0 : index
    %c0_2 = arith.constant 0 : index
    %1 = vector.load %arg1[%c0_1, %c0_2] : memref<16x128xf32, #tpu.memory_space<vmem>>, vector<16x128xf32>
    %2 = arith.subf %0, %1 : vector<16x128xf32>
    %3 = arith.mulf %2, %2 : vector<16x128xf32>
    %4 = vector.shape_cast %3 : vector<16x128xf32> to vector<1x16x128xf32>
    %cst = arith.constant dense<0.000000e+00> : vector<1xf32>
    %5 = vector.multi_reduction <add>, %4, %cst [1, 2] : vector<1x16x128xf32> to vector<1xf32>
    %6 = vector.shape_cast %5 : vector<1xf32> to vector<1x1x1xf32>
    %7 = vector.extract %6[0, 0, 0] : f32 from vector<1x1x1xf32>
    %cst_3 = arith.constant 4.8828125E-4 : f32
    %8 = arith.mulf %7, %cst_3 : f32
    %c0_4 = arith.constant 0 : index
    %c0_5 = arith.constant 0 : index
    %9 = memref.load %arg2[%c0_4, %c0_5] : memref<1x1xf32, #tpu.memory_space<smem>>
    memref.store %8, %arg2[%c0_4, %c0_5] : memref<1x1xf32, #tpu.memory_space<smem>>
    return
  }
}

</mosaic_0001>

<bundles_post_ra>
// kernel: tpu_custom_call.1
= control target key start
LH: loop header
LB: loop body
LE: loop exit
PB: predicated region body
PF: predicated region fallthrough
CT: control target
= control target key end

     0   :  { %7 = vsyncpa [#allocation3], 0  ;;  %s184_s0 = inlined_call_operand.hbm [shape: f32[16,128], index: 0, kind: input, shape index: {}]   ;;  %s185_s1 = inlined_call_operand.hbm [shape: f32[16,128], index: 1, kind: input, shape index: {}]   ;;  %s186_s2 = inlined_call_operand.hbm [shape: f32[1,1], index: 2, kind: output, shape index: {}]  }
   0x1   :  { %8 = vsyncpa [#allocation6], 0 }
   0x2   :  { %9 = vsyncpa [#allocation4], 0  ;;  %s14_s11 = sshll.u32 %s184_s0, 4  ;;  %s155_s12 = smov [#allocation2]   ;;  %s15_s11 = int_to_ptr.hbm [resolvable:$true] %s14_s11 }
   0x3   :  { %s16_s13 = sshll.u32 %s155_s12, 4  ;;  %s27_s16 = sshll.u32 %s185_s1, 4  ;;  %s17_s13 = int_to_ptr.vmem [resolvable:$true] %s16_s13  ;;  %s28_s16 = int_to_ptr.hbm [resolvable:$true] %s27_s16 }
   0x4   :  { %s156_s17 = smov 128   ;;  %s157_s18 = smov 8  }
   0x5   :  { %22 = dma.hbm_to_vmem [thread:$0]  %s15_s11, 256, %s17_s13, [#allocation3], %s156_s17, %s156_s17, %s157_s18  }
   0x6   :  { %s158_s19 = smov [#allocation5]  }
   0x7   :  { %s29_s20 = sshll.u32 %s158_s19, 4  ;;  %s30_s20 = int_to_ptr.vmem [resolvable:$true] %s29_s20 }
   0x8   :  { %35 = dma.hbm_to_vmem [thread:$0]  %s28_s16, 256, %s30_s20, [#allocation6], %s156_s17, %s156_s17, %s157_s18  }
   0x9   :  { %149 = dma.done.wait [#allocation3], 256  }
   0xa   :  { %150 = vsyncadd [#allocation3], 4294967040 }
   0xb   :  { %151 = dma.done.wait [#allocation6], 256  }
   0xc   :  { %152 = vsyncadd [#allocation6], 4294967040  ;;  %v44_v0 = vld [vmem:[#allocation2] sm:$0xff]  ;;  %v45_v1 = vld [vmem:[#allocation2 + $0x8] sm:$0xff]  ;;  %s70_s21 = sshll.u32 %s186_s2, 4  ;;  %s159_s24 = smov [#allocation7]   ;;  %s71_s21 = int_to_ptr.hbm [resolvable:$true] %s70_s21 }
   0xd   :  { %v46_v2 = vld [vmem:[#allocation5] sm:$0xff]  ;;  %v47_v3 = vld [vmem:[#allocation5 + $0x8] sm:$0xff] }
   0xe   :  { %v48_v4 = vsub.f32 %v44_v0, %v46_v2  ;;  %v49_v5 = vsub.f32 %v45_v1, %v47_v3 }
  0x10   :  { %v50_v6 = vmul.f32 %v48_v4, %v48_v4  ;;  %v51_v7 = vmul.f32 %v49_v5, %v49_v5 }
  0x12   :  { %v52_v8 = vadd.f32 %v51_v7, %v50_v6 }
  0x14   :  { %53 = vadd.xlane.f32.xlu0 %v52_v8 }
  0x87   :  { %v54_v9 = vpop.xlane.xlu0 %53 }
  0x88   :  { %v55_v10 = vrot.slane %v54_v9, 4 }
  0x8a   :  { %v56_v11 = vadd.f32 %v55_v10, %v54_v9 }
  0x8c   :  { %v57_v12 = vrot.slane %v56_v11, 2 }
  0x8e   :  { %v58_v13 = vadd.f32 %v57_v12, %v56_v11 }
  0x90   :  { %v59_v14 = vrot.slane %v58_v13, 1 }
  0x92   :  { %v60_v15 = vadd.f32 %v59_v14, %v58_v13 }
  0x94   :  { %82 = vpush %v60_v15 }
  0xc5   :  { %s83_s22 = spop %82 }
  0xc6   :  { %s62_s23 = smul.f32 0.00048828125, %s83_s22 }
  0xc8   :  { %64 = sst [smem:[#allocation7]] %s62_s23 }
  0xc9   :  { %73 = dma.smem_to_hbm %s159_s24, 16, %s71_s21, [#allocation4]  }
  0xca   :  { %153 = dma.done.wait [#allocation4], 16  }
  0xcb   :  { %154 = vsyncadd [#allocation4], 4294967280 }
  0xcc   :  { %78 = sfence }
  0xcd   :  { %79 = vsyncpa [#allocation3], 1 }
  0xce   :  { %80 = vsyncpa [#allocation6], 1 }
  0xcf   :  { %81 = vsyncpa [#allocation4], 1 }

</bundles_post_ra>
